<compile_context>
chip_gen: v7x
topology: tpu7x:2x2x1
jax: 0.10.0
libtpu: 0.0.40
codegen_flags: <defaults>
</compile_context>

<pallas_src>
import jax
import jax.numpy as jnp
from jax import lax
from jax.experimental import pallas as pl
from jax.experimental.pallas import tpu as pltpu

EPS = 1e-4        # matches nn.BatchNorm1d(..., eps=0.0001)
LANE = 128        # TPU lane width
_NEG_BIG = -1e30  # mask value for padded output lanes


def _round_up(n, m):
    return (n + m - 1) // m * m


def _default_batch_tile():
    # Per-generation guidance: v5e ~2048-4096 (16 MiB scoped-VMEM default),
    # v6e ~4096-8192 (32 MiB scoped / 128 MiB physical), v7x ~2048-4096
    # (64 MiB physical VMEM).  2048 is safe everywhere; bump on v6e.
    try:
        kind = jax.devices()[0].device_kind.lower()
    except Exception:
        return 2048
    if "v6" in kind:
        return 4096
    return 2048


# -----------------------------------------------------------------------------
# Pass 1: per-feature batch statistics of h = x @ sign(W1).T
# -----------------------------------------------------------------------------
def _make_stats_kernel():
    def kernel(x_ref, w1_ref, stat_ref):
        @pl.when(pl.program_id(0) == 0)
        def _():
            stat_ref[...] = jnp.zeros_like(stat_ref)

        # fc1 (bias b1 omitted: exactly cancelled by the BN mean subtraction).
        h = jnp.dot(x_ref[...], w1_ref[...],
                    preferred_element_type=jnp.float32)            # (TB, H_pad)
        stat_ref[0:1, :] += jnp.sum(h, axis=0, keepdims=True)      # Σ h
        stat_ref[1:2, :] += jnp.sum(h * h, axis=0, keepdims=True)  # Σ h²

    return kernel


# -----------------------------------------------------------------------------
# Pass 2: recompute h, fused BN+sign threshold, fc5, masked log-softmax
# -----------------------------------------------------------------------------
def _make_apply_kernel(h_pad, out_valid, out_pad, inv_n):
    def kernel(x_ref, w1_ref, w2_ref, aux_ref, stat_ref, o_ref):
        # fc1 again (K=32: recompute is ~free while HBM-bound).
        h = jnp.dot(x_ref[...], w1_ref[...],
                    preferred_element_type=jnp.float32)            # (TB, H_pad)

        aux = aux_ref[...]                                         # (3, W) f32
        g = aux[0:1, :h_pad]                                       # gamma
        be = aux[1:2, :h_pad]                                      # beta
        b2 = aux[2:3, :out_pad]                                    # fc5 bias

        # BatchNorm (batch stats) fused with sign() into a per-feature
        # threshold compare (invstd > 0):
        #   sign(g*(h-mean)*invstd + beta)  ==  (g*h >= g*mean - beta*sqrt(var+eps))
        stat = stat_ref[...]                                       # (2, H_pad)
        mean = stat[0:1, :] * inv_n
        var = jnp.maximum(stat[1:2, :] * inv_n - mean * mean, 0.0)
        thresh = g * mean - be * jnp.sqrt(var + EPS)
        # Single compare+select instead of jnp.sign (differs only on exact 0s;
        # pad columns of h hit zero rows of w2b, so they never matter).
        hsign = jnp.where(g * h >= thresh, 1.0, -1.0).astype(jnp.bfloat16)

        # fc5: all operands are +/-1 (or 0 on pads) -> exact in bf16, f32 acc.
        logits = jnp.dot(hsign, w2_ref[...],
                         preferred_element_type=jnp.float32)       # (TB, O_pad)
        logits = logits + b2

        # LogSoftmax over the valid output columns; pad lanes masked off.
        col = lax.broadcasted_iota(jnp.int32, logits.shape, 1)
        logits = jnp.where(col < out_valid, logits, _NEG_BIG)
        m = jnp.max(logits, axis=-1, keepdims=True)
        s = logits - m
        lse = jnp.log(jnp.sum(jnp.exp(s), axis=-1, keepdims=True))
        o_ref[...] = (s - lse).astype(o_ref.dtype)                 # lane-dense store

    return kernel


# -----------------------------------------------------------------------------
# One-time parameter prep (hoisted out of the per-call path)
# -----------------------------------------------------------------------------
def prepare_params(params):
    """Binarize weights, pad feature dims lane-dense, pre-transpose for the
    canonical MXU feed, and pack the small per-feature vectors."""
    w1, w2 = params["w1"], params["w2"]
    hidden, in_f = w1.shape
    out_f = w2.shape[0]
    h_pad = _round_up(hidden, LANE)
    out_pad = _round_up(out_f, LANE)
    width = max(h_pad, out_pad)

    # fc1 weight: sign, transpose to (In, H_pad), keep f32 (tiny -> avoids an
    # in-kernel upcast). Pad columns are zero.
    w1b = jnp.zeros((in_f, h_pad), jnp.float32)
    w1b = w1b.at[:, :hidden].set(jnp.sign(w1).T.astype(jnp.float32))

    # fc5 weight: sign, transpose to (H_pad, O_pad), bf16 (+/-1 exact).
    w2b = jnp.zeros((h_pad, out_pad), jnp.bfloat16)
    w2b = w2b.at[:hidden, :out_f].set(jnp.sign(w2).T.astype(jnp.bfloat16))

    aux = jnp.zeros((3, width), jnp.float32)
    aux = aux.at[0, :hidden].set(params["gamma1"])
    aux = aux.at[1, :hidden].set(params["beta1"])
    aux = aux.at[2, :out_f].set(params["b2"])

    return {"w1b": w1b, "w2b": w2b, "aux": aux,
            "in": in_f, "hidden": hidden, "h_pad": h_pad,
            "out": out_f, "out_pad": out_pad}


# -----------------------------------------------------------------------------
# Forward wrapper: two batch-tiled pallas_calls
# -----------------------------------------------------------------------------
def bnn_1blk_50_forward(x, prep, *, batch_tile=None, out_dtype=jnp.float32):
    """x: (B, in_features) f32.  prep: output of prepare_params.
    Returns (B, out_features) log-probabilities."""
    B, in_f = x.shape
    assert in_f == prep["in"]
    h_pad, out_valid, out_pad = prep["h_pad"], prep["out"], prep["out_pad"]
    width = prep["aux"].shape[1]

    # Batch tiling: multiple of 8 sublanes; pad the batch with zero rows.
    tb = batch_tile if batch_tile is not None else _default_batch_tile()
    tb = max(8, _round_up(min(tb, _round_up(B, 8)), 8))
    b_pad = _round_up(B, tb)
    if b_pad != B:
        # Zero rows contribute 0 to both Σh and Σh² (stats divide by the true
        # B below), and their outputs are sliced away afterwards.
        x = jnp.pad(x, ((0, b_pad - B), (0, 0)))
    grid = (b_pad // tb,)

    x_spec = pl.BlockSpec((tb, in_f), lambda b: (b, 0))
    # Constant index maps -> weights / stats DMA'd once, stay VMEM-resident.
    w1_spec = pl.BlockSpec((in_f, h_pad), lambda b: (0, 0))
    w2_spec = pl.BlockSpec((h_pad, out_pad), lambda b: (0, 0))
    aux_spec = pl.BlockSpec((3, width), lambda b: (0, 0))
    stat_spec = pl.BlockSpec((2, h_pad), lambda b: (0, 0))

    vmem_limit = 32 * 1024 * 1024  # > v5e's 16 MiB default, safe on all gens

    # ---- pass 1: batch statistics ------------------------------------------
    flops_stats = 2 * b_pad * in_f * h_pad + 3 * b_pad * h_pad
    bytes_stats = b_pad * in_f * 4 + in_f * h_pad * 4 + 2 * h_pad * 4
    stats = pl.pallas_call(
        _make_stats_kernel(),
        out_shape=jax.ShapeDtypeStruct((2, h_pad), jnp.float32),
        grid=grid,
        in_specs=[x_spec, w1_spec],
        out_specs=stat_spec,
        compiler_params=pltpu.CompilerParams(
            dimension_semantics=("arbitrary",),   # output-resident accumulator
            vmem_limit_bytes=vmem_limit),
        cost_estimate=pl.CostEstimate(flops=int(flops_stats),
                                      transcendentals=0,
                                      bytes_accessed=int(bytes_stats)),
    )(x, prep["w1b"])

    # ---- pass 2: apply -------------------------------------------------------
    out_itemsize = jnp.dtype(out_dtype).itemsize
    flops_apply = (2 * b_pad * in_f * h_pad + 2 * b_pad * h_pad * out_pad
                   + 8 * b_pad * h_pad + 6 * b_pad * out_pad)
    trans_apply = b_pad * (out_pad + 1)           # exp per lane + log per row
    bytes_apply = (b_pad * in_f * 4 + in_f * h_pad * 4 + h_pad * out_pad * 2
                   + 3 * width * 4 + 2 * h_pad * 4 + b_pad * out_pad * out_itemsize)
    out = pl.pallas_call(
        _make_apply_kernel(h_pad, out_valid, out_pad, 1.0 / B),
        out_shape=jax.ShapeDtypeStruct((b_pad, out_pad), out_dtype),
        grid=grid,
        in_specs=[x_spec, w1_spec, w2_spec, aux_spec, stat_spec],
        out_specs=pl.BlockSpec((tb, out_pad), lambda b: (b, 0)),
        compiler_params=pltpu.CompilerParams(
            dimension_semantics=("parallel",),    # both TensorCores on v7x
            vmem_limit_bytes=vmem_limit),
        cost_estimate=pl.CostEstimate(flops=int(flops_apply),
                                      transcendentals=int(trans_apply),
                                      bytes_accessed=int(bytes_apply)),
    )(x, prep["w1b"], prep["w2b"], prep["aux"], stats)

    # NOTE: for max throughput the consumer can take the padded (b_pad, O_pad)
    # slab directly (this slice is an extra HBM pass over the output).
    return out[:B, :out_valid]


# -----------------------------------------------------------------------------
# Parameter init + pure-JAX reference (matches the PyTorch forward, b1 incl.)
# -----------------------------------------------------------------------------
def init_params(key, in_features, hidden, out_features):
    k1, k2, k3, k4 = jax.random.split(key, 4)
    lim1 = 1.0 / jnp.sqrt(in_features)
    lim2 = 1.0 / jnp.sqrt(hidden)
    return {
        "w1": jax.random.uniform(k1, (hidden, in_features), jnp.float32, -lim1, lim1),
        "b1": jax.random.uniform(k2, (hidden,), jnp.float32, -lim1, lim1),
        "gamma1": jnp.ones((hidden,), jnp.float32),
        "beta1": jnp.zeros((hidden,), jnp.float32),
        "w2": jax.random.uniform(k3, (out_features, hidden), jnp.float32, -lim2, lim2),
        "b2": jax.random.uniform(k4, (out_features,), jnp.float32, -lim2, lim2),
    }


def _reference_forward(x, p):
    h = x @ jnp.sign(p["w1"]).T + p["b1"]
    mean = jnp.mean(h, axis=0, keepdims=True)
    var = jnp.mean((h - mean) ** 2, axis=0, keepdims=True)
    h = (h - mean) / jnp.sqrt(var + EPS) * p["gamma1"] + p["beta1"]
    h = jnp.sign(h)
    logits = h @ jnp.sign(p["w2"]).T + p["b2"]
    return jax.nn.log_softmax(logits, axis=-1)


if __name__ == "__main__":
    key = jax.random.PRNGKey(0)
    kx, kp = jax.random.split(key)

    B, IN_FEATURES, HIDDEN, OUT_FEATURES = 8, 32, 50, 10
    x = jax.random.normal(kx, (B, IN_FEATURES), jnp.float32)
    params = init_params(kp, IN_FEATURES, HIDDEN, OUT_FEATURES)

    prep = prepare_params(params)          # one-time: binarize / pad / transpose
    out = bnn_1blk_50_forward(x, prep)
    out = jax.block_until_ready(out)

    ref = _reference_forward(x, params)
    assert out.shape == (B, OUT_FEATURES)
    assert jnp.max(jnp.abs(out - ref)) < 1e-4

    print("KERNEL_OK")
</pallas_src>

<mosaic_0001>
module attributes {stable_mosaic.version = 11 : i64} {
  func.func @kernel(%arg0: i32, %arg1: memref<8x32xf32, #tpu.memory_space<vmem>>, %arg2: memref<32x128xf32, #tpu.memory_space<vmem>>, %arg3: memref<2x128xf32, #tpu.memory_space<vmem>>) attributes {dimension_semantics = [#tpu.dimension_semantics<arbitrary>], iteration_bounds = array<i64: 1>, scalar_prefetch = 0 : i64, scratch_operands = 0 : i64, tpu.core_type = #tpu.core_type<tc>, window_params = [{transform_indices = @transform_0, window_bounds = array<i64: 8, 32>}, {pipeline_mode = #tpu.pipeline_mode<synchronous>, transform_indices = @transform_1, window_bounds = array<i64: 32, 128>}, {pipeline_mode = #tpu.pipeline_mode<synchronous>, transform_indices = @transform_2, window_bounds = array<i64: 2, 128>}]} {
    %c0_i32 = arith.constant 0 : i32
    %0 = arith.cmpi eq, %arg0, %c0_i32 : i32
    %1 = arith.extui %0 : i1 to i32
    %c0_i32_0 = arith.constant 0 : i32
    %2 = arith.cmpi ne, %1, %c0_i32_0 : i32
    scf.if %2 {
      %cst_13 = arith.constant 0.000000e+00 : f32
      %17 = vector.broadcast %cst_13 : f32 to vector<2x128xf32>
      %c0_14 = arith.constant 0 : index
      %c0_15 = arith.constant 0 : index
      %18 = vector.load %arg3[%c0_14, %c0_15] : memref<2x128xf32, #tpu.memory_space<vmem>>, vector<2x128xf32>
      tpu.vector_store %arg3[%c0_14, %c0_15], %17 {strides = array<i32>} : memref<2x128xf32, #tpu.memory_space<vmem>>, vector<2x128xf32>,
    } else {
    }
    %c0 = arith.constant 0 : index
    %c0_1 = arith.constant 0 : index
    %3 = vector.load %arg1[%c0, %c0_1] : memref<8x32xf32, #tpu.memory_space<vmem>>, vector<8x32xf32>
    %c0_2 = arith.constant 0 : index
    %c0_3 = arith.constant 0 : index
    %4 = vector.load %arg2[%c0_2, %c0_3] : memref<32x128xf32, #tpu.memory_space<vmem>>, vector<32x128xf32>
    %cst = arith.constant dense<0.000000e+00> : vector<8x128xf32>
    %5 = tpu.matmul %3, %4, %cst {dimension_numbers = #tpu.dot_dimension_numbers<[1], [0], [0], [1], [0, 0, 1, 1], [], []>} : vector<8x32xf32>, vector<32x128xf32>, vector<8x128xf32> -> vector<8x128xf32>
    %c0_4 = arith.constant 0 : index
    %c0_5 = arith.constant 0 : index
    %6 = vector.load %arg3[%c0_4, %c0_5] : memref<2x128xf32, #tpu.memory_space<vmem>>, vector<1x128xf32>
    %cst_6 = arith.constant dense<0.000000e+00> : vector<128xf32>
    %7 = vector.multi_reduction <add>, %5, %cst_6 [0] : vector<8x128xf32> to vector<128xf32>
    %8 = vector.shape_cast %7 : vector<128xf32> to vector<1x128xf32>
    %9 = arith.addf %6, %8 : vector<1x128xf32>
    %c0_7 = arith.constant 0 : index
    %c0_8 = arith.constant 0 : index
    %10 = vector.load %arg3[%c0_7, %c0_8] : memref<2x128xf32, #tpu.memory_space<vmem>>, vector<1x128xf32>
    tpu.vector_store %arg3[%c0_7, %c0_8], %9 {strides = array<i32>} : memref<2x128xf32, #tpu.memory_space<vmem>>, vector<1x128xf32>,
    %c1 = arith.constant 1 : index
    %c0_9 = arith.constant 0 : index
    %11 = vector.load %arg3[%c1, %c0_9] : memref<2x128xf32, #tpu.memory_space<vmem>>, vector<1x128xf32>
    %12 = arith.mulf %5, %5 : vector<8x128xf32>
    %cst_10 = arith.constant dense<0.000000e+00> : vector<128xf32>
    %13 = vector.multi_reduction <add>, %12, %cst_10 [0] : vector<8x128xf32> to vector<128xf32>
    %14 = vector.shape_cast %13 : vector<128xf32> to vector<1x128xf32>
    %15 = arith.addf %11, %14 : vector<1x128xf32>
    %c1_11 = arith.constant 1 : index
    %c0_12 = arith.constant 0 : index
    %16 = vector.load %arg3[%c1_11, %c0_12] : memref<2x128xf32, #tpu.memory_space<vmem>>, vector<1x128xf32>
    tpu.vector_store %arg3[%c1_11, %c0_12], %15 {strides = array<i32>} : memref<2x128xf32, #tpu.memory_space<vmem>>, vector<1x128xf32>,
    return
  }
  func.func @transform_0(%arg0: i32) -> (i32, i32) {
    %c0_i32 = arith.constant 0 : i32
    %c0_i32_0 = arith.constant 0 : i32
    return %arg0, %c0_i32 : i32, i32
  }
  func.func @transform_1(%arg0: i32) -> (i32, i32) {
    %c0_i32 = arith.constant 0 : i32
    %c0_i32_0 = arith.constant 0 : i32
    %c0_i32_1 = arith.constant 0 : i32
    return %c0_i32, %c0_i32_0 : i32, i32
  }
  func.func @transform_2(%arg0: i32) -> (i32, i32) {
    %c0_i32 = arith.constant 0 : i32
    %c0_i32_0 = arith.constant 0 : i32
    %c0_i32_1 = arith.constant 0 : i32
    return %c0_i32, %c0_i32_0 : i32, i32
  }
}

</mosaic_0001>

<bundles_post_ra>
// kernel: tpu_custom_call.1
= control target key start
LH: loop header
LB: loop body
LE: loop exit
PB: predicated region body
PF: predicated region fallthrough
CT: control target
= control target key end

     0   :  { %7 = vsyncpa [#allocation3], 0  ;;  %s326_s0 = inlined_call_operand.hbm [shape: f32[8,32], index: 0, kind: input, shape index: {}]   ;;  %s327_s1 = inlined_call_operand.hbm [shape: f32[32,128], index: 1, kind: input, shape index: {}]   ;;  %s328_s2 = inlined_call_operand.hbm [shape: f32[2,128], index: 2, kind: output, shape index: {}]  }
   0x1   :  { %8 = vsyncpa [#allocation6], 0 }
   0x2   :  { %9 = vsyncpa [#allocation4], 0  ;;  %s260_s9 = smov [#allocation2]   ;;  %s261_s11 = smov [#allocation5]  }
   0x3   :  { %s16_s10 = sshll.u32 %s260_s9, 4  ;;  %s25_s12 = sshll.u32 %s261_s11, 4  ;;  %s17_s10 = int_to_ptr.vmem [resolvable:$true] %s16_s10  ;;  %s283_s12 = int_to_ptr.vmem [resolvable:$true] %s25_s12 }
   0x4   :  { %s188_s15 = scalar_lea.hbm %s326_s0, 128 }
   0x5   :  { %p189_p0 = scmp.ne.s32.totalorder %s326_s0, %s188_s15  ;;  %p192_p1 = scmp.lt.u32.totalorder %s188_s15, %s326_s0 }
   0x7   :  { %p194_p2 = pnand %p192_p1, %p189_p0 }
   0x9   :  { %197 = shalt.err (!%p194_p2)
}
   0xa   :  { %s198_s20 = scalar_lea.vmem %s17_s10, 128  ;;  %p203_p4 = scmp.lt.s32.totalorder %s17_s10, %s17_s10 }
   0xb   :  { %p199_p3 = scmp.ne.s32.totalorder %s17_s10, %s198_s20  ;;  %p204_p5 = scmp.lt.s32.totalorder %s198_s20, %s198_s20 }
   0xd   :  { %p205_p6 = por %p204_p5, %p203_p4 }
   0xf   :  { %p206_p7 = pnand %p205_p6, %p199_p3 }
  0x11   :  { %209 = shalt.err (!%p206_p7)
}
  0x12   :  { %19 = dma.hbm_to_vmem [thread:$0]  %s326_s0, 128, %s17_s10, [#allocation3]  }
  0x13   :  { %s210_s25 = scalar_lea.hbm %s327_s1, 512 }
  0x14   :  { %p211_p8 = scmp.ne.s32.totalorder %s327_s1, %s210_s25  ;;  %p214_p9 = scmp.lt.u32.totalorder %s210_s25, %s327_s1 }
  0x16   :  { %p216_p10 = pnand %p214_p9, %p211_p8 }
  0x18   :  { %219 = shalt.err (!%p216_p10)
}
  0x19   :  { %s220_s30 = scalar_lea.vmem %s283_s12, 512  ;;  %p225_p12 = scmp.lt.s32.totalorder %s283_s12, %s283_s12 }
  0x1a   :  { %p221_p11 = scmp.ne.s32.totalorder %s283_s12, %s220_s30  ;;  %p226_p13 = scmp.lt.s32.totalorder %s220_s30, %s220_s30 }
  0x1c   :  { %p227_p0 = por %p226_p13, %p225_p12 }
  0x1e   :  { %p228_p1 = pnand %p227_p0, %p221_p11 }
  0x20   :  { %231 = shalt.err (!%p228_p1)
}
  0x21   :  { %s262_s0 = smov 128   ;;  %s263_s3 = smov 8  }
  0x22   :  { %31 = dma.hbm_to_vmem [thread:$0]  %s327_s1, 512, %s283_s12, [#allocation6], %s262_s0, %s262_s0, %s263_s3  }
  0x23   :  { %254 = dma.done.wait [#allocation3], 128  }
  0x24   :  { %255 = vsyncadd [#allocation3], 4294967168 }
  0x25   :  { %256 = dma.done.wait [#allocation6], 512  }
  0x26   :  { %257 = vsyncadd [#allocation6], 4294966784  ;;  %v264_v0 = vmov 0.0|0.0   ;;  %v265_v1 = vmov 0.0   ;;  %vm266_vm0 = vmmov 0   ;;  %v44_v2 = vld [vmem:[#allocation5] sm:$0xff] }
  0x27   :  { %174 = vmatprep.subr.bf16.mxu0 %v264_v0  ;;  %42 = vst [vmem:[#allocation7] sm:$0x3] %v265_v1  ;;  %171 = vmatprep.mubr.msk.f32.mxu0 %vm266_vm0, %v265_v1  ;;  %v45_v3 = vld [vmem:[#allocation5 + $0x8] sm:$0xff]  ;;  %v46_v4 = vld [vmem:[#allocation5 + $0x10] sm:$0xff]  ;;  %v47_v6 = vld [vmem:[#allocation5 + $0x18] sm:$0xff]  ;;  %vm48_vm1 = vcmask 261120  }
  0x28   :  { %v175_v5 = vpack.c.bf16 %v45_v3, %v44_v2  ;;  %v178_v7 = vpack.c.bf16 %v47_v6, %v46_v4  ;;  %v43_v8 = vld [vmem:[#allocation2] sm:$0xff]  ;;  %s267_s1 = smov [#allocation7]  }
  0x29   :  { %s147_s6 = sshll.u32 %s267_s1, 4  ;;  %s148_s6 = int_to_ptr.vmem [resolvable:$true] %s147_s6 }
  0x2a   :  { %176 = vmatpush3.bf16.msra.mxu0 %v175_v5  ;;  %s232_s7 = scalar_lea.vmem %s148_s6, 32  ;;  %p237_p3 = scmp.lt.s32.totalorder %s148_s6, %s148_s6 }
  0x2b   :  { %177 = vmatprep.subr.bf16.mxu0 %v264_v0  ;;  %p233_p2 = scmp.ne.s32.totalorder %s148_s6, %s232_s7  ;;  %p238_p4 = scmp.lt.s32.totalorder %s232_s7, %s232_s7 }
  0x2d   :  { %p239_p5 = por %p238_p4, %p237_p3 }
  0x2e   :  { %179 = vmatpush3.bf16.msra.mxu0 %v178_v7  ;;  %v122_v21 = vld [vmem:[#allocation7] sm:$0x1]  ;;  %v131_v24 = vld [vmem:[#allocation7 + $0x1] sm:$0x1] }
  0x2f   :  { %p240_p6 = pnand %p239_p5, %p233_p2 }
  0x31   :  { %172 = vmatmul.mubr.msk.f32.vlgmr.msra.gmra.mrb[0].mxu0 %vm48_vm1, %v43_v8 }
 0x104   :  { %v118_v9 = vpop.f32.mrb[0].mxu0 }
 0x105   :  { %v123_v10 = vrot.slane %v118_v9, 4  ;;  %v132_v11 = vmul.f32 %v118_v9, %v118_v9  ;;  %v173_v12 = vpop.f32.mrb[1].mxu0 }
 0x107   :  { %v124_v13 = vadd.f32 %v123_v10, %v118_v9  ;;  %v133_v14 = vrot.slane %v132_v11, 4 }
 0x109   :  { %v125_v15 = vrot.slane %v124_v13, 2  ;;  %v134_v16 = vadd.f32 %v133_v14, %v132_v11 }
 0x10b   :  { %v126_v17 = vadd.f32 %v125_v15, %v124_v13  ;;  %v135_v18 = vrot.slane %v134_v16, 2 }
 0x10d   :  { %v127_v19 = vrot.slane %v126_v17, 1  ;;  %v136_v20 = vadd.f32 %v135_v18, %v134_v16 }
 0x10f   :  { %v128_v22 = vadd.f32 %v127_v19, %v126_v17  ;;  %v137_v23 = vrot.slane %v136_v20, 1 }
 0x111   :  { %v138_v25 = vadd.f32 %v137_v23, %v136_v20  ;;  %v129_v26 = vadd.f32 %v128_v22, %v122_v21 }
 0x113   :  { %130 = vst [vmem:[#allocation7] sm:$0x1] %v129_v26  ;;  %v139_v27 = vadd.f32 %v138_v25, %v131_v24 }
 0x115   :  { %140 = vst [vmem:[#allocation7 + $0x1] sm:$0x1] %v139_v27 }
 0x116   :  { %243 = shalt.err (!%p240_p6)
}
 0x117   :  { %s244_s10 = scalar_lea.hbm %s328_s2, 32 }
 0x118   :  { %p245_p7 = scmp.ne.s32.totalorder %s328_s2, %s244_s10  ;;  %p248_p8 = scmp.lt.u32.totalorder %s244_s10, %s328_s2 }
 0x11a   :  { %p250_p9 = pnand %p248_p8, %p245_p7 }
 0x11c   :  { %253 = shalt.err (!%p250_p9)
}
 0x11d   :  { %150 = dma.vmem_to_hbm [thread:$0]  %s148_s6, 32, %s328_s2, [#allocation4]  }
 0x11e   :  { %258 = dma.done.wait [#allocation4], 32  }
 0x11f   :  { %259 = vsyncadd [#allocation4], 4294967264 }
 0x120   :  { %154 = vsyncpa [#allocation3], 1 }
 0x121   :  { %155 = vsyncpa [#allocation6], 1 }
 0x122   :  { %156 = vsyncpa [#allocation4], 1 }

</bundles_post_ra>
